<compile_context>
chip_gen: v7x
topology: tpu7x:2x2x1
jax: 0.10.0
libtpu: 0.0.40
codegen_flags: <defaults>
</compile_context>

<pallas_src>
import functools

import jax
import jax.numpy as jnp
from jax.experimental import pallas as pl
from jax.experimental.pallas import tpu as pltpu

SUBLANE_BF16 = 16          # bf16 sublane packing -> keep batch tiles % 16
NEG_BIG = -1e30            # masks padded class lanes out of the log-softmax

IN_FEATURES = 28 * 28      # 784 (kept at logical K; no lane zero-padding)
HIDDEN = 64
HIDDEN_PAD = 128
NUM_CLASSES = 10
NUM_CLASSES_PAD = 128


def _round_up(x, m):
    return (x + m - 1) // m * m


def _mlp_logsoftmax_kernel(x_ref, w1_ref, b1_ref, w2_ref, b2_ref,
                           w3_ref, b3_ref, o_ref):
    """SimpleNetwork forward for one (TB, 784) batch tile, fully in VMEM."""
    # In-kernel bf16 cast of the x tile (VPU work on VMEM data, zero HBM cost);
    # all MXU accumulation stays f32 via preferred_element_type.
    x = x_ref[...].astype(jnp.bfloat16)                      # (TB, 784)

    # Linear(784->64) + ReLU (output lanes padded 64->128 with zero weights).
    h1 = jnp.dot(x, w1_ref[...], preferred_element_type=jnp.float32) + b1_ref[...]
    h1 = jnp.maximum(h1, 0.0)
    # Dropout(0.1): identity in eval mode.
    # TODO(synk): training-mode dropout would use pltpu.prng_seed/prng_random_bits.

    # Linear(64->64) + ReLU (padded 128->128).
    h2 = jnp.dot(h1.astype(jnp.bfloat16), w2_ref[...],
                 preferred_element_type=jnp.float32) + b2_ref[...]
    h2 = jnp.maximum(h2, 0.0)

    # Linear(64->10) (padded 128->128).  Padded class lanes carry bias NEG_BIG
    # so they drop out of the max / sum-exp reductions below.
    logits = jnp.dot(h2.astype(jnp.bfloat16), w3_ref[...],
                     preferred_element_type=jnp.float32) + b3_ref[...]

    # LogSoftmax(dim=1): numerically stable, all math in f32, full-lane-width
    # (128) reductions; only the final lane-dense (TB, 128) store is bf16.
    m = jnp.max(logits, axis=1, keepdims=True)
    shifted = logits - m
    lse = jnp.log(jnp.sum(jnp.exp(shifted), axis=1, keepdims=True))
    o_ref[...] = (shifted - lse).astype(o_ref.dtype)


@functools.partial(jax.jit, static_argnames=("block_b",))
def worker_forward(x, w1, b1, w2, b2, w3, b3, *, block_b=1024):
    """x: (B, C, H, W) float32 NCHW. Returns (B, NUM_CLASSES) f32 log-probs.

    block_b sweep guidance: <=1024 on v5e (16 MiB scoped VMEM), 1024-2048 on
    v6e/v7x.  Weights/biases must be pre-padded via pad_params()."""
    B = x.shape[0]
    x_flat = x.reshape(B, -1)                  # Flatten: free metadata reshape
    in_features = x_flat.shape[1]
    assert w1.shape[0] == in_features

    # Tile sizing: minimal batch padding (ragged last block handled by Pallas
    # OOB masking, no wrapper copy); >=2 tiles whenever B allows so v7x's two
    # TensorCores both get work (negligible 0.35 us/step cost on v5e/v6e).
    num_tiles = pl.cdiv(B, block_b)
    if B >= 2 * SUBLANE_BF16:
        num_tiles = max(num_tiles, 2)
    tb = _round_up(pl.cdiv(B, num_tiles), SUBLANE_BF16)
    grid = (pl.cdiv(B, tb),)

    # Advisory cost: true HBM bytes (x read + bf16 out write + weights) so XLA
    # doesn't treat the custom call as free.
    w_bytes = 2 * (in_features * HIDDEN_PAD + HIDDEN_PAD * HIDDEN_PAD
                   + HIDDEN_PAD * NUM_CLASSES_PAD) + 4 * 3 * HIDDEN_PAD
    cost = pl.CostEstimate(
        flops=2 * B * (in_features * HIDDEN_PAD + HIDDEN_PAD * HIDDEN_PAD
                       + HIDDEN_PAD * NUM_CLASSES_PAD),
        transcendentals=B * (NUM_CLASSES_PAD + 1),
        bytes_accessed=B * in_features * 4 + B * NUM_CLASSES_PAD * 2 + w_bytes,
    )

    const2 = lambda i: (0, 0)   # weights/biases resident across all grid steps
    out = pl.pallas_call(
        _mlp_logsoftmax_kernel,
        out_shape=jax.ShapeDtypeStruct((B, NUM_CLASSES_PAD), jnp.bfloat16),
        grid=grid,
        in_specs=[
            pl.BlockSpec((tb, in_features), lambda i: (i, 0)),       # x tile
            pl.BlockSpec((in_features, HIDDEN_PAD), const2),         # w1
            pl.BlockSpec((1, HIDDEN_PAD), const2),                   # b1
            pl.BlockSpec((HIDDEN_PAD, HIDDEN_PAD), const2),          # w2
            pl.BlockSpec((1, HIDDEN_PAD), const2),                   # b2
            pl.BlockSpec((HIDDEN_PAD, NUM_CLASSES_PAD), const2),     # w3
            pl.BlockSpec((1, NUM_CLASSES_PAD), const2),              # b3
        ],
        out_specs=pl.BlockSpec((tb, NUM_CLASSES_PAD), lambda i: (i, 0)),
        compiler_params=pltpu.CompilerParams(
            dimension_semantics=("parallel",)),   # megacore sharding on v7x
        cost_estimate=cost,
    )(x_flat, w1, b1, w2, b2, w3, b3)

    # Strip the padded class lanes; restore f32 to match the PyTorch reference.
    return out[:, :NUM_CLASSES].astype(jnp.float32)


def pad_params(w1, b1, w2, b2, w3, b3):
    """Pad logical (in, out) weights / (out,) biases to lane multiples.

    Weights -> bf16 (MXU inputs / HBM traffic); biases stay f32 and are added
    after the f32 accumulation.  w1 keeps its logical K=784.  Padded class-lane
    biases get NEG_BIG so they vanish from the log-softmax.  Zero-padded weight
    rows/cols do not change the result."""
    def pad_w(w, rows, cols):
        out = jnp.zeros((rows, cols), jnp.float32)
        return out.at[:w.shape[0], :w.shape[1]].set(w).astype(jnp.bfloat16)

    def pad_b(b, cols, fill=0.0):
        out = jnp.full((1, cols), fill, jnp.float32)
        return out.at[0, :b.shape[0]].set(b)

    return (pad_w(w1, IN_FEATURES, HIDDEN_PAD),
            pad_b(b1, HIDDEN_PAD),
            pad_w(w2, HIDDEN_PAD, HIDDEN_PAD),
            pad_b(b2, HIDDEN_PAD),
            pad_w(w3, HIDDEN_PAD, NUM_CLASSES_PAD),
            pad_b(b3, NUM_CLASSES_PAD, fill=NEG_BIG))


def init_params(key, in_features=IN_FEATURES, hidden=HIDDEN,
                num_classes=NUM_CLASSES):
    """Deterministic synthetic weights with SimpleNetwork's logical shapes."""
    k1, k2, k3 = jax.random.split(key, 3)
    w1 = jax.random.normal(k1, (in_features, hidden), jnp.float32) * 0.02
    b1 = jnp.zeros((hidden,), jnp.float32)
    w2 = jax.random.normal(k2, (hidden, hidden), jnp.float32) * 0.05
    b2 = jnp.full((hidden,), 0.01, jnp.float32)
    w3 = jax.random.normal(k3, (hidden, num_classes), jnp.float32) * 0.05
    b3 = jnp.zeros((num_classes,), jnp.float32)
    return w1, b1, w2, b2, w3, b3


def _reference(x, w1, b1, w2, b2, w3, b3):
    """Pure-JAX f32 SimpleNetwork forward (eval mode) for tolerance checks."""
    xf = x.reshape(x.shape[0], -1)
    h1 = jnp.maximum(xf @ w1 + b1, 0.0)
    h2 = jnp.maximum(h1 @ w2 + b2, 0.0)
    logits = h2 @ w3 + b3
    return jax.nn.log_softmax(logits, axis=1)


if __name__ == "__main__":
    key = jax.random.PRNGKey(0)
    kx, kp = jax.random.split(key)

    # Small input consistent with SimpleNetwork defaults: (B, 1, 28, 28) NCHW.
    x = jax.random.normal(kx, (2, 1, 28, 28), jnp.float32)
    logical = init_params(kp)
    padded = pad_params(*logical)

    out = worker_forward(x, *padded)
    out = jax.block_until_ready(out)

    assert out.shape == (2, NUM_CLASSES)
    # Sanity: log-softmax rows sum to 1 in probability space (bf16 store ->
    # tolerance a few 1e-3).
    row_sums = jnp.sum(jnp.exp(out), axis=1)
    assert bool(jnp.all(jnp.abs(row_sums - 1.0) < 2e-2))
    # Tolerance check against the pure-JAX f32 reference (bf16 MXU inputs and
    # bf16 output store -> small, bounded divergence).
    ref = _reference(x, *logical)
    assert bool(jnp.all(jnp.abs(out - ref) < 0.1))

    print("KERNEL_OK")
</pallas_src>

<mosaic_0001>
module attributes {stable_mosaic.version = 11 : i64} {
  func.func @_mlp_logsoftmax_kernel(%arg0: i32, %arg1: memref<16x784xf32, #tpu.memory_space<vmem>>, %arg2: memref<784x128xbf16, #tpu.memory_space<vmem>>, %arg3: memref<1x128xf32, #tpu.memory_space<vmem>>, %arg4: memref<128x128xbf16, #tpu.memory_space<vmem>>, %arg5: memref<1x128xf32, #tpu.memory_space<vmem>>, %arg6: memref<128x128xbf16, #tpu.memory_space<vmem>>, %arg7: memref<1x128xf32, #tpu.memory_space<vmem>>, %arg8: memref<16x128xbf16, #tpu.memory_space<vmem>>) attributes {dimension_semantics = [#tpu.dimension_semantics<parallel>], iteration_bounds = array<i64: 1>, scalar_prefetch = 0 : i64, scratch_operands = 0 : i64, tpu.core_type = #tpu.core_type<tc>, window_params = [{transform_indices = @transform_0, window_bounds = array<i64: 16, 784>}, {pipeline_mode = #tpu.pipeline_mode<synchronous>, transform_indices = @transform_1, window_bounds = array<i64: 784, 128>}, {pipeline_mode = #tpu.pipeline_mode<synchronous>, transform_indices = @transform_2, window_bounds = array<i64: 1, 128>}, {pipeline_mode = #tpu.pipeline_mode<synchronous>, transform_indices = @transform_3, window_bounds = array<i64: 128, 128>}, {pipeline_mode = #tpu.pipeline_mode<synchronous>, transform_indices = @transform_4, window_bounds = array<i64: 1, 128>}, {pipeline_mode = #tpu.pipeline_mode<synchronous>, transform_indices = @transform_5, window_bounds = array<i64: 128, 128>}, {pipeline_mode = #tpu.pipeline_mode<synchronous>, transform_indices = @transform_6, window_bounds = array<i64: 1, 128>}, {transform_indices = @transform_7, window_bounds = array<i64: 16, 128>}]} {
    %c0 = arith.constant 0 : index
    %c0_0 = arith.constant 0 : index
    %0 = vector.load %arg1[%c0, %c0_0] : memref<16x784xf32, #tpu.memory_space<vmem>>, vector<16x784xf32>
    %1 = arith.truncf %0 : vector<16x784xf32> to vector<16x784xbf16>
    %c0_1 = arith.constant 0 : index
    %c0_2 = arith.constant 0 : index
    %2 = vector.load %arg2[%c0_1, %c0_2] : memref<784x128xbf16, #tpu.memory_space<vmem>>, vector<784x128xbf16>
    %cst = arith.constant dense<0.000000e+00> : vector<16x128xf32>
    %3 = tpu.matmul %1, %2, %cst {dimension_numbers = #tpu.dot_dimension_numbers<[1], [0], [0], [1], [0, 0, 1, 1], [], []>} : vector<16x784xbf16>, vector<784x128xbf16>, vector<16x128xf32> -> vector<16x128xf32>
    %c0_3 = arith.constant 0 : index
    %c0_4 = arith.constant 0 : index
    %4 = vector.load %arg3[%c0_3, %c0_4] : memref<1x128xf32, #tpu.memory_space<vmem>>, vector<1x128xf32>
    %5 = vector.broadcast %4 : vector<1x128xf32> to vector<16x128xf32>
    %6 = arith.addf %3, %5 : vector<16x128xf32>
    %cst_5 = arith.constant 0.000000e+00 : f32
    %7 = vector.broadcast %cst_5 : f32 to vector<16x128xf32>
    %8 = arith.maximumf %6, %7 : vector<16x128xf32>
    %9 = arith.truncf %8 : vector<16x128xf32> to vector<16x128xbf16>
    %c0_6 = arith.constant 0 : index
    %c0_7 = arith.constant 0 : index
    %10 = vector.load %arg4[%c0_6, %c0_7] : memref<128x128xbf16, #tpu.memory_space<vmem>>, vector<128x128xbf16>
    %cst_8 = arith.constant dense<0.000000e+00> : vector<16x128xf32>
    %11 = tpu.matmul %9, %10, %cst_8 {dimension_numbers = #tpu.dot_dimension_numbers<[1], [0], [0], [1], [0, 0, 1, 1], [], []>} : vector<16x128xbf16>, vector<128x128xbf16>, vector<16x128xf32> -> vector<16x128xf32>
    %c0_9 = arith.constant 0 : index
    %c0_10 = arith.constant 0 : index
    %12 = vector.load %arg5[%c0_9, %c0_10] : memref<1x128xf32, #tpu.memory_space<vmem>>, vector<1x128xf32>
    %13 = vector.broadcast %12 : vector<1x128xf32> to vector<16x128xf32>
    %14 = arith.addf %11, %13 : vector<16x128xf32>
    %cst_11 = arith.constant 0.000000e+00 : f32
    %15 = vector.broadcast %cst_11 : f32 to vector<16x128xf32>
    %16 = arith.maximumf %14, %15 : vector<16x128xf32>
    %17 = arith.truncf %16 : vector<16x128xf32> to vector<16x128xbf16>
    %c0_12 = arith.constant 0 : index
    %c0_13 = arith.constant 0 : index
    %18 = vector.load %arg6[%c0_12, %c0_13] : memref<128x128xbf16, #tpu.memory_space<vmem>>, vector<128x128xbf16>
    %cst_14 = arith.constant dense<0.000000e+00> : vector<16x128xf32>
    %19 = tpu.matmul %17, %18, %cst_14 {dimension_numbers = #tpu.dot_dimension_numbers<[1], [0], [0], [1], [0, 0, 1, 1], [], []>} : vector<16x128xbf16>, vector<128x128xbf16>, vector<16x128xf32> -> vector<16x128xf32>
    %c0_15 = arith.constant 0 : index
    %c0_16 = arith.constant 0 : index
    %20 = vector.load %arg7[%c0_15, %c0_16] : memref<1x128xf32, #tpu.memory_space<vmem>>, vector<1x128xf32>
    %21 = vector.broadcast %20 : vector<1x128xf32> to vector<16x128xf32>
    %22 = arith.addf %19, %21 : vector<16x128xf32>
    %cst_17 = arith.constant dense<0xFF800000> : vector<16xf32>
    %23 = vector.multi_reduction <maximumf>, %22, %cst_17 [1] : vector<16x128xf32> to vector<16xf32>
    %24 = vector.shape_cast %23 : vector<16xf32> to vector<16x1xf32>
    %25 = vector.broadcast %24 : vector<16x1xf32> to vector<16x128xf32>
    %26 = arith.subf %22, %25 : vector<16x128xf32>
    %27 = math.exp %26 : vector<16x128xf32>
    %cst_18 = arith.constant dense<0.000000e+00> : vector<16xf32>
    %28 = vector.multi_reduction <add>, %27, %cst_18 [1] : vector<16x128xf32> to vector<16xf32>
    %29 = vector.shape_cast %28 : vector<16xf32> to vector<16x1xf32>
    %30 = math.log %29 : vector<16x1xf32>
    %31 = vector.broadcast %30 : vector<16x1xf32> to vector<16x128xf32>
    %32 = arith.subf %26, %31 : vector<16x128xf32>
    %33 = arith.truncf %32 : vector<16x128xf32> to vector<16x128xbf16>
    %c0_19 = arith.constant 0 : index
    %c0_20 = arith.constant 0 : index
    %34 = vector.load %arg8[%c0_19, %c0_20] : memref<16x128xbf16, #tpu.memory_space<vmem>>, vector<16x128xbf16>
    tpu.vector_store %arg8[%c0_19, %c0_20], %33 {strides = array<i32>} : memref<16x128xbf16, #tpu.memory_space<vmem>>, vector<16x128xbf16>,
    return
  }
  func.func @transform_0(%arg0: i32) -> (i32, i32) {
    %c0_i32 = arith.constant 0 : i32
    %c0_i32_0 = arith.constant 0 : i32
    return %arg0, %c0_i32 : i32, i32
  }
  func.func @transform_1(%arg0: i32) -> (i32, i32) {
    %c0_i32 = arith.constant 0 : i32
    %c0_i32_0 = arith.constant 0 : i32
    %c0_i32_1 = arith.constant 0 : i32
    return %c0_i32, %c0_i32_0 : i32, i32
  }
  func.func @transform_2(%arg0: i32) -> (i32, i32) {
    %c0_i32 = arith.constant 0 : i32
    %c0_i32_0 = arith.constant 0 : i32
    %c0_i32_1 = arith.constant 0 : i32
    return %c0_i32, %c0_i32_0 : i32, i32
  }
  func.func @transform_3(%arg0: i32) -> (i32, i32) {
    %c0_i32 = arith.constant 0 : i32
    %c0_i32_0 = arith.constant 0 : i32
    %c0_i32_1 = arith.constant 0 : i32
    return %c0_i32, %c0_i32_0 : i32, i32
  }
  func.func @transform_4(%arg0: i32) -> (i32, i32) {
    %c0_i32 = arith.constant 0 : i32
    %c0_i32_0 = arith.constant 0 : i32
    %c0_i32_1 = arith.constant 0 : i32
    return %c0_i32, %c0_i32_0 : i32, i32
  }
  func.func @transform_5(%arg0: i32) -> (i32, i32) {
    %c0_i32 = arith.constant 0 : i32
    %c0_i32_0 = arith.constant 0 : i32
    %c0_i32_1 = arith.constant 0 : i32
    return %c0_i32, %c0_i32_0 : i32, i32
  }
  func.func @transform_6(%arg0: i32) -> (i32, i32) {
    %c0_i32 = arith.constant 0 : i32
    %c0_i32_0 = arith.constant 0 : i32
    %c0_i32_1 = arith.constant 0 : i32
    return %c0_i32, %c0_i32_0 : i32, i32
  }
  func.func @transform_7(%arg0: i32) -> (i32, i32) {
    %c0_i32 = arith.constant 0 : i32
    %c0_i32_0 = arith.constant 0 : i32
    return %arg0, %c0_i32 : i32, i32
  }
}

</mosaic_0001>

<bundles_post_ra>
// kernel: worker_forward.1
= control target key start
LH: loop header
LB: loop body
LE: loop exit
PB: predicated region body
PF: predicated region fallthrough
CT: control target
= control target key end

     0   :  { %12 = vsyncpa [#allocation3], 0  ;;  %s1494_s24 = smov [#allocation2]   ;;  %s1707_s0 = inlined_call_operand.vmem [shape: f32[2,784], index: 0, kind: input, shape index: {}]   ;;  %s1708_s1 = inlined_call_operand.hbm [shape: bf16[784,128], index: 1, kind: input, shape index: {}]   ;;  %s1709_s2 = inlined_call_operand.vmem [shape: f32[1,128], index: 2, kind: input, shape index: {}]   ;;  %s1710_s3 = inlined_call_operand.vmem [shape: bf16[128,128], index: 3, kind: input, shape index: {}]   ;;  %s1711_s4 = inlined_call_operand.vmem [shape: f32[1,128], index: 4, kind: input, shape index: {}]   ;;  %s1712_s5 = inlined_call_operand.vmem [shape: bf16[128,128], index: 5, kind: input, shape index: {}]   ;;  %s1713_s6 = inlined_call_operand.vmem [shape: f32[1,128], index: 6, kind: input, shape index: {}]   ;;  %s1714_s7 = inlined_call_operand.vmem [shape: bf16[2,128], index: 7, kind: output, shape index: {}]  }
   0x1   :  { %s20_s25 = sshll.u32 %s1494_s24, 4  ;;  %s1470_s28 = scalar_lea.hbm %s1708_s1, 6272  ;;  %s21_s25 = int_to_ptr.vmem [resolvable:$true] %s20_s25 }
   0x2   :  { %p1471_p0 = scmp.ne.s32.totalorder %s1708_s1, %s1470_s28  ;;  %p1474_p1 = scmp.lt.u32.totalorder %s1470_s28, %s1708_s1 }
   0x4   :  { %p1476_p2 = pnand %p1474_p1, %p1471_p0 }
   0x6   :  { %1479 = shalt.err (!%p1476_p2)
}
   0x7   :  { %s1480_s10 = scalar_lea.vmem %s21_s25, 6272  ;;  %p1485_p4 = scmp.lt.s32.totalorder %s21_s25, %s21_s25 }
   0x8   :  { %p1481_p3 = scmp.ne.s32.totalorder %s21_s25, %s1480_s10  ;;  %p1486_p5 = scmp.lt.s32.totalorder %s1480_s10, %s1480_s10 }
   0xa   :  { %p1487_p6 = por %p1486_p5, %p1485_p4 }
   0xc   :  { %p1488_p7 = pnand %p1487_p6, %p1481_p3 }
   0xe   :  { %1491 = shalt.err (!%p1488_p7)
}
   0xf   :  { %s1495_s11 = smov 64   ;;  %s1496_s12 = smov 4  }
  0x10   :  { %26 = dma.hbm_to_vmem [thread:$0]  %s1708_s1, 6272, %s21_s25, [#allocation3], %s1495_s11, %s1495_s11, %s1496_s12  }
  0x11   :  { %1492 = dma.done.wait [#allocation3], 6272  }
  0x12   :  { %1493 = vsyncadd [#allocation3], 4294961024  ;;  %v1373_v0 = vld [vmem:[#allocation2 + $0x40] sm:$0xff]   ;;  %v1377_v4 = vld [vmem:[#allocation2 + $0x48] sm:$0xff]   ;;  %v1497_v24 = vmov 1983009808   ;;  %v80_v26 = vlaneseq }
  0x13   :  { %v1374_v1 = vld [vmem:[#allocation2] sm:$0xff]   ;;  %1234 = vmatprep.subr.bf16.mxu0 %v1373_v0  ;;  %v1378_v5 = vld [vmem:[#allocation2 + $0x8] sm:$0xff]   ;;  %v1381_v8 = vld [vmem:[#allocation2 + $0x50] sm:$0xff]   ;;  %v78_v25 = vunpack.c.l.s4 %v1497_v24  ;;  %v1498_v58 = vmov 0.0   ;;  %vm1499_vm0 = vmmov 0   ;;  %vm635_vm1 = vcmask 130048  }
  0x14   :  { %v1375_v2 = vld [vmem:[#allocation2 + $0xc0] sm:$0xff]   ;;  %1235 = vmatpush3.bf16.msra.mxu0 %v1374_v1  ;;  %v1379_v6 = vld [vmem:[#allocation2 + $0xc8] sm:$0xff]   ;;  %v1382_v9 = vld [vmem:[#allocation2 + $0x10] sm:$0xff]   ;;  %v1553_v32 = vshrl.u32 %v80_v26, 7 }
  0x15   :  { %v1376_v3 = vld [vmem:[#allocation2 + $0x80] sm:$0xff]   ;;  %1256 = vmatprep.subr.bf16.mxu1 %v1375_v2  ;;  %1236 = vmatprep.subr.bf16.mxu0 %v1377_v4  ;;  %v1380_v7 = vld [vmem:[#allocation2 + $0x88] sm:$0xff]   ;;  %v1383_v10 = vld [vmem:[#allocation2 + $0xd0] sm:$0xff]   ;;  %v79_v31 = vunpack.c.0.s8 %v78_v25 }
  0x16   :  { %1257 = vmatpush3.bf16.msra.mxu1 %v1376_v3  ;;  %v1384_v11 = vld [vmem:[#allocation2 + $0x90] sm:$0xff]   ;;  %v1385_v12 = vld [vmem:[#allocation2 + $0x58] sm:$0xff]   ;;  %v1389_v16 = vld [vmem:[#allocation2 + $0x60] sm:$0xff]  }
  0x17   :  { %1258 = vmatprep.subr.bf16.mxu1 %v1379_v6  ;;  %v1386_v13 = vld [vmem:[#allocation2 + $0x18] sm:$0xff]   ;;  %v1390_v17 = vld [vmem:[#allocation2 + $0x20] sm:$0xff]   ;;  %v1393_v20 = vld [vmem:[#allocation2 + $0x68] sm:$0xff]   ;;  %v1556_v36 = vsub.s32 %v79_v31, %v1553_v32 }
  0x18   :  { %1237 = vmatpush3.bf16.msra.mxu0 %v1378_v5  ;;  %v1387_v14 = vld [vmem:[#allocation2 + $0xd8] sm:$0xff]   ;;  %v1391_v18 = vld [vmem:[#allocation2 + $0xe0] sm:$0xff]   ;;  %v1394_v21 = vld [vmem:[#allocation2 + $0x28] sm:$0xff]  }
  0x19   :  { %1238 = vmatprep.subr.bf16.mxu0 %v1381_v8  ;;  %v1388_v15 = vld [vmem:[#allocation2 + $0x98] sm:$0xff]   ;;  %v1392_v19 = vld [vmem:[#allocation2 + $0xa0] sm:$0xff]   ;;  %v1395_v22 = vld [vmem:[#allocation2 + $0xe8] sm:$0xff]  }
  0x1a   :  { %1259 = vmatpush3.bf16.msra.mxu1 %v1380_v7  ;;  %v1396_v23 = vld [vmem:[#allocation2 + $0xa8] sm:$0xff]   ;;  %v1397_v27 = vld [vmem:[#allocation2 + $0x70] sm:$0xff]   ;;  %v1401_v33 = vld [vmem:[#allocation2 + $0x78] sm:$0xff]  }
  0x1b   :  { %1260 = vmatprep.subr.bf16.mxu1 %v1383_v10  ;;  %v1398_v28 = vld [vmem:[#allocation2 + $0x30] sm:$0xff]   ;;  %v1402_v34 = vld [vmem:[#allocation2 + $0x38] sm:$0xff]   ;;  %v1413_v46 = vld [vmem:[#allocation2 + $0x140] sm:$0xff]  }
  0x1c   :  { %1239 = vmatpush3.bf16.msra.mxu0 %v1382_v9  ;;  %v1399_v29 = vld [vmem:[#allocation2 + $0xf0] sm:$0xff]   ;;  %v1403_v35 = vld [vmem:[#allocation2 + $0xf8] sm:$0xff]   ;;  %v1418_v62 = vld [vmem:[#allocation2 + $0x100] sm:$0xff]  }
  0x1d   :  { %1240 = vmatprep.subr.bf16.mxu0 %v1385_v12  ;;  %v1400_v30 = vld [vmem:[#allocation2 + $0xb0] sm:$0xff]   ;;  %v1406_v38 = vld [vmem:[%s1707_s0 + $0x1c] ss:$14 sps:$4 sm:$0xff]   ;;  %v1408_v39 = vld [vmem:[%s1707_s0 + $0x38] ss:$14 sps:$4 sm:$0xff]  }
  0x1e   :  { %1261 = vmatpush3.bf16.msra.mxu1 %v1384_v11  ;;  %v1404_v37 = vld [vmem:[%s1707_s0] ss:$14 sps:$4 sm:$0xff]   ;;  %v1412_v42 = vld [vmem:[#allocation2 + $0xb8] sm:$0xff]   ;;  %v97_v43 = vrot.slane %v1406_v38, %v1556_v36  ;;  %v154_v44 = vrot.slane %v1408_v39, %v1556_v36  ;;  %v1414_v47 = vld [vmem:[%s1707_s0 + $0x4] ss:$14 sps:$4 sm:$0xff]  }
  0x1f   :  { %1262 = vmatprep.subr.bf16.mxu1 %v1387_v14  ;;  %v1410_v40 = vld [vmem:[%s1707_s0 + $0x54] ss:$14 sps:$4 sm:$0xff]   ;;  %v83_v41 = vrot.slane %v1404_v37, %v1556_v36  ;;  %v1416_v49 = vld [vmem:[%s1707_s0 + $0x3c] ss:$14 sps:$4 sm:$0xff]   ;;  %v1417_v54 = vld [vmem:[%s1707_s0 + $0x58] ss:$14 sps:$4 sm:$0xff]   ;;  %v90_v55 = vrot.slane %v1414_v47, %v1556_v36 }
  0x20   :  { %1241 = vmatpush3.bf16.msra.mxu0 %v1386_v13  ;;  %v168_v45 = vrot.slane %v1410_v40, %v1556_v36  ;;  %v1415_v48 = vld [vmem:[%s1707_s0 + $0x20] ss:$14 sps:$4 sm:$0xff]   ;;  %v161_v57 = vrot.slane %v1416_v49, %v1556_v36  ;;  %v175_v61 = vrot.slane %v1417_v54, %v1556_v36  ;;  %v1423_v9 = vld [vmem:[#allocation2 + $0x158] sm:$0xff]  }
  0x21   :  { %1242 = vmatprep.subr.bf16.mxu0 %v1389_v16  ;;  %v106_v50 = vcombine.high %v83_v41, %v97_v43  ;;  %v105_v52 = vcombine.low %v83_v41, %v97_v43  ;;  %v104_v56 = vrot.slane %v1415_v48, %v1556_v36  ;;  %v1419_v1 = vld [vmem:[#allocation2 + $0x148] sm:$0xff]   ;;  %v1421_v7 = vld [vmem:[#allocation2 + $0x150] sm:$0xff]   ;;  %v1424_v10 = vld [vmem:[#allocation2 + $0x118] sm:$0xff]  }
  0x22   :  { %1263 = vmatpush3.bf16.msra.mxu1 %v1388_v15  ;;  %v177_v51 = vcombine.high %v154_v44, %v168_v45  ;;  %v176_v53 = vcombine.low %v154_v44, %v168_v45  ;;  %v179_v2 = vcombine.high %v161_v57, %v175_v61  ;;  %v178_v3 = vcombine.low %v161_v57, %v175_v61  ;;  %v1420_v6 = vld [vmem:[#allocation2 + $0x108] sm:$0xff]   ;;  %v1422_v8 = vld [vmem:[#allocation2 + $0x110] sm:$0xff]   ;;  %v1425_v11 = vld [vmem:[#allocation2 + $0x160] sm:$0xff]  }
  0x23   :  { %1264 = vmatprep.subr.bf16.mxu1 %v1391_v18  ;;  %v108_v63 = vcombine.high %v90_v55, %v104_v56  ;;  %v107_v0 = vcombine.low %v90_v55, %v104_v56  ;;  %v1426_v12 = vld [vmem:[#allocation2 + $0x120] sm:$0xff]   ;;  %v1427_v14 = vld [vmem:[#allocation2 + $0x168] sm:$0xff]   ;;  %v1429_v24 = vld [vmem:[#allocation2 + $0x170] sm:$0xff]  }
  0x24   :  { %1243 = vmatpush3.bf16.msra.mxu0 %v1390_v17  ;;  %v230_v59 = vpack.c.bf16 %v177_v51, %v106_v50  ;;  %v229_v60 = vpack.c.bf16 %v176_v53, %v105_v52  ;;  %v1433_v13 = vld [vmem:[#allocation2 + $0x180] sm:$0xff]   ;;  %v1434_v15 = vld [vmem:[%s1707_s0 + $0x8] ss:$14 sps:$4 sm:$0xff]   ;;  %v1436_v16 = vld [vmem:[%s1707_s0 + $0xc] ss:$14 sps:$4 sm:$0x33]  }
  0x25   :  { %1244 = vmatprep.subr.bf16.mxu0 %v1393_v20  ;;  %v232_v4 = vpack.c.bf16 %v179_v2, %v108_v63  ;;  %v231_v5 = vpack.c.bf16 %v178_v3, %v107_v0  ;;  %v1437_v17 = vld [vmem:[%s1707_s0 + $0x24] ss:$14 sps:$4 sm:$0xff]   ;;  %v1439_v18 = vld [vmem:[%s1707_s0 + $0x28] ss:$14 sps:$4 sm:$0x33]   ;;  %v119_v20 = vrot.slane %v1434_v15, %v1556_v36  ;;  %v1431_v37 = vld [vmem:[#allocation2 + $0x178] sm:$0xff]  }
  0x26   :  { %1265 = vmatpush3.bf16.msra.mxu1 %v1392_v19  ;;  %671 = vmatprep.mubr.bf16.mxu0 %v230_v59  ;;  %v1428_v19 = vld [vmem:[#allocation2 + $0x128] sm:$0xff]   ;;  %v133_v25 = vrot.slane %v1437_v17, %v1556_v36  ;;  %v140_v26 = vrot.slane %v1439_v18, %v1556_v36  ;;  %v1430_v31 = vld [vmem:[#allocation2 + $0x130] sm:$0xff]   ;;  %v1432_v41 = vld [vmem:[#allocation2 + $0x138] sm:$0xff]  }
  0x27   :  { %1266 = vmatprep.subr.bf16.mxu1 %v1395_v22  ;;  %712 = vmatprep.mubr.bf16.mxu1 %v232_v4  ;;  %v1440_v22 = vld [vmem:[%s1707_s0 + $0x40] ss:$14 sps:$4 sm:$0xff]   ;;  %v1449_v49 = vld [vmem:[%s1710_s3 + $0x18] sm:$0xff]  }
  0x28   :  { %1245 = vmatpush3.bf16.msra.mxu0 %v1394_v21  ;;  %v126_v21 = vrot.slane %v1436_v16, %v1556_v36  ;;  %v141_v44 = vcombine.low %v119_v20, %v133_v25  ;;  %v1447_v47 = vld [vmem:[%s1710_s3 + $0x8] sm:$0xff]   ;;  %v1448_v48 = vld [vmem:[%s1710_s3 + $0x10] sm:$0xff]   ;;  %v1450_v50 = vld [vmem:[%s1710_s3 + $0x20] sm:$0xff]  }
  0x29   :  { %1246 = vmatprep.subr.bf16.mxu0 %v1397_v27  ;;  %v1443_v27 = vld [vmem:[%s1707_s0 + $0x5c] ss:$14 sps:$4 sm:$0xff]   ;;  %v1452_v52 = vld [vmem:[%s1710_s3 + $0x30] sm:$0xff]   ;;  %v1454_v54 = vld [vmem:[%s1712_s5] sm:$0xff]  }
  0x2a   :  { %1267 = vmatpush3.bf16.msra.mxu1 %v1396_v23  ;;  %v1442_v23 = vld [vmem:[%s1707_s0 + $0x44] ss:$14 sps:$4 sm:$0x33]   ;;  %v143_v38 = vcombine.low %v126_v21, %v140_v26  ;;  %v1451_v51 = vld [vmem:[%s1710_s3 + $0x28] sm:$0xff]   ;;  %v1453_v53 = vld [vmem:[%s1710_s3 + $0x38] sm:$0xff]  }
  0x2b   :  { %1268 = vmatprep.subr.bf16.mxu1 %v1399_v29  ;;  %v190_v29 = vrot.slane %v1440_v22, %v1556_v36  ;;  %v1455_v55 = vld [vmem:[%s1712_s5 + $0x8] sm:$0xff]   ;;  %v1456_v56 = vld [vmem:[%s1712_s5 + $0x10] sm:$0xff]   ;;  %v1457_v57 = vld [vmem:[%s1712_s5 + $0x18] sm:$0xff]  }
  0x2c   :  { %1247 = vmatpush3.bf16.msra.mxu0 %v1398_v28  ;;  %v1445_v28 = vld [vmem:[%s1707_s0 + $0x60] ss:$14 sps:$4 sm:$0x33]  }
  0x2d   :  { %1248 = vmatprep.subr.bf16.mxu0 %v1401_v33  ;;  %v142_v33 = vcombine.high %v119_v20, %v133_v25  ;;  %v1458_v59 = vld [vmem:[%s1712_s5 + $0x20] sm:$0xff]  }
  0x2e   :  { %1269 = vmatpush3.bf16.msra.mxu1 %v1400_v30  ;;  %v197_v30 = vrot.slane %v1442_v23, %v1556_v36 }
  0x2f   :  { %1270 = vmatprep.subr.bf16.mxu1 %v1403_v35  ;;  %v211_v35 = vrot.slane %v1445_v28, %v1556_v36 }
  0x30   :  { %1249 = vmatpush3.bf16.msra.mxu0 %v1402_v34  ;;  %v204_v34 = vrot.slane %v1443_v27, %v1556_v36 }
  0x31   :  { %1278 = vmatprep.subr.bf16.mxu0 %v1413_v46  ;;  %v214_v40 = vcombine.low %v197_v30, %v211_v35  ;;  %v1446_v46 = vld [vmem:[%s1710_s3] sm:$0xff]  }
  0x32   :  { %1271 = vmatpush3.bf16.msra.mxu1 %v1412_v42  ;;  %v213_v39 = vcombine.high %v190_v29, %v204_v34  ;;  %v212_v45 = vcombine.low %v190_v29, %v204_v34  ;;  %v1211_v34 = vld [vmem:[%s1711_s4] ss:$0 sm:$0xff] }
  0x33   :  { %1320 = vmatprep.subr.bf16.mxu1 %v1498_v58  ;;  %672 = vmatmul.mubr.bf16.vlgmr.msra.gmra.mrb[0].mxu0 %v229_v60  ;;  %v235_v43 = vpack.c.bf16 %v214_v40, %v143_v38  ;;  %v1459_v60 = vld [vmem:[%s1712_s5 + $0x28] sm:$0xff]  }
  0x34   :  { %1279 = vmatpush3.bf16.msra.mxu0 %v1418_v62  ;;  %v234_v42 = vpack.c.bf16 %v213_v39, %v142_v33  ;;  %v233_v36 = vpack.c.bf16 %v212_v45, %v141_v44  ;;  %v1160_v62 = vld [vmem:[%s1709_s2] ss:$0 sm:$0xff]  ;;  %v1461_v33 = vld [vmem:[%s1712_s5 + $0x38] sm:$0xff]  }
  0x35   :  { %1280 = vmatprep.subr.bf16.mxu0 %v1419_v1  ;;  %713 = vmatmul.mubr.bf16.vlgmr.msra.gmra.mrb[0].mxu1 %v231_v5 }
  0x36   :  { %1322 = vmatprep.mubr.msk.bf16.mxu1 %vm1499_vm0, %v1498_v58  ;;  %1321 = vmatpush3.bf16.msra.mxu1 %v1433_v13 }
  0x37   :  { %1326 = vmatprep.subr.bf16.mxu1 %v1498_v58  ;;  %753 = vmatprep.mubr.bf16.mxu0 %v234_v42 }
  0x38   :  { %1281 = vmatpush3.bf16.msra.mxu0 %v1420_v6 }
  0x39   :  { %1282 = vmatprep.subr.bf16.mxu0 %v1421_v7 }
  0x3c   :  { %1283 = vmatpush3.bf16.msra.mxu0 %v1422_v8 }
  0x3d   :  { %1284 = vmatprep.subr.bf16.mxu0 %v1423_v9  ;;  %1323 = vmatmul.mubr.msk.bf16.vlgmr.msra.gmra.mrb[4].mxu1 %vm635_vm1, %v235_v43 }
  0x3e   :  { %1342 = vmatprep.mubr.msk.bf16.mxu1 %vm1499_vm0, %v1498_v58  ;;  %1327 = vmatpush3.bf16.msra.mxu1 %v1446_v46 }
  0x3f   :  { %1328 = vmatprep.subr.bf16.mxu1 %v1498_v58 }
  0x40   :  { %1285 = vmatpush3.bf16.msra.mxu0 %v1424_v10 }
  0x41   :  { %1286 = vmatprep.subr.bf16.mxu0 %v1425_v11 }
  0x42   :  { %1329 = vmatpush3.bf16.msra.mxu1 %v1447_v47 }
  0x43   :  { %1330 = vmatprep.subr.bf16.mxu1 %v1498_v58 }
  0x44   :  { %1287 = vmatpush3.bf16.msra.mxu0 %v1426_v12 }
  0x45   :  { %1288 = vmatprep.subr.bf16.mxu0 %v1427_v14 }
  0x46   :  { %1331 = vmatpush3.bf16.msra.mxu1 %v1448_v48 }
  0x47   :  { %1332 = vmatprep.subr.bf16.mxu1 %v1498_v58 }
  0x48   :  { %1289 = vmatpush3.bf16.msra.mxu0 %v1428_v19 }
  0x49   :  { %1290 = vmatprep.subr.bf16.mxu0 %v1429_v24 }
  0x4a   :  { %1333 = vmatpush3.bf16.msra.mxu1 %v1449_v49 }
  0x4b   :  { %1334 = vmatprep.subr.bf16.mxu1 %v1498_v58 }
  0x4c   :  { %1291 = vmatpush3.bf16.msra.mxu0 %v1430_v31  ;;  %v1460_v31 = vld [vmem:[%s1712_s5 + $0x30] sm:$0xff]  }
  0x4d   :  { %1292 = vmatprep.subr.bf16.mxu0 %v1431_v37 }
  0x4e   :  { %1335 = vmatpush3.bf16.msra.mxu1 %v1450_v50 }
  0x4f   :  { %1336 = vmatprep.subr.bf16.mxu1 %v1498_v58 }
  0x50   :  { %1293 = vmatpush3.bf16.msra.mxu0 %v1432_v41 }
  0x51   :  { %1346 = vmatprep.subr.bf16.mxu0 %v1498_v58 }
  0x52   :  { %1337 = vmatpush3.bf16.msra.mxu1 %v1451_v51 }
  0x53   :  { %754 = vmatmul.mubr.bf16.vlgmr.msra.gmra.mrb[4].mxu0 %v233_v36  ;;  %1338 = vmatprep.subr.bf16.mxu1 %v1498_v58 }
  0x54   :  { %1362 = vmatprep.mubr.msk.bf16.mxu0 %vm1499_vm0, %v1498_v58  ;;  %1347 = vmatpush3.bf16.msra.mxu0 %v1454_v54 }
  0x55   :  { %1348 = vmatprep.subr.bf16.mxu0 %v1498_v58 }
  0x56   :  { %1339 = vmatpush3.bf16.msra.mxu1 %v1452_v52 }
  0x57   :  { %1340 = vmatprep.subr.bf16.mxu1 %v1498_v58 }
  0x58   :  { %1349 = vmatpush3.bf16.msra.mxu0 %v1455_v55 }
  0x59   :  { %1350 = vmatprep.subr.bf16.mxu0 %v1498_v58 }
  0x5a   :  { %1341 = vmatpush3.bf16.msra.mxu1 %v1453_v53 }
  0x5c   :  { %1351 = vmatpush3.bf16.msra.mxu0 %v1456_v56 }
  0x5d   :  { %1352 = vmatprep.subr.bf16.mxu0 %v1498_v58 }
  0x60   :  { %1353 = vmatpush3.bf16.msra.mxu0 %v1457_v57 }
  0x61   :  { %1354 = vmatprep.subr.bf16.mxu0 %v1498_v58 }
  0x64   :  { %1355 = vmatpush3.bf16.msra.mxu0 %v1458_v59 }
  0x65   :  { %1356 = vmatprep.subr.bf16.mxu0 %v1498_v58 }
  0x68   :  { %1357 = vmatpush3.bf16.msra.mxu0 %v1459_v60 }
  0x69   :  { %1358 = vmatprep.subr.bf16.mxu0 %v1498_v58 }
  0x6c   :  { %1359 = vmatpush3.bf16.msra.mxu0 %v1460_v31 }
  0x6d   :  { %1360 = vmatprep.subr.bf16.mxu0 %v1498_v58  ;;  %v1220_v58 = vld [vmem:[%s1713_s6] ss:$0 sm:$0xff] }
  0x70   :  { %1361 = vmatpush3.bf16.msra.mxu0 %v1461_v33 }
 0x106   :  { %v1250_v61 = vpop.f32.mrb[0].mxu0 }
 0x107   :  { %v1251_v63 = vpop.f32.mrb[1].mxu0 }
 0x108   :  { %v1252_v0 = vadd.f32 %v1251_v63, %v1250_v61  ;;  %v1253_v1 = vpop.f32.mrb[2].mxu0  ;;  %v1272_v4 = vpop.f32.mrb[0].mxu1  ;;  %v1500_v61 = vmov 1966171168  }
 0x109   :  { %v1254_v2 = vpop.f32.mrb[3].mxu0  ;;  %v1273_v6 = vpop.f32.mrb[1].mxu1 }
 0x10a   :  { %v674_v3 = vadd.f32 %v1252_v0, %v1160_v62  ;;  %v1255_v5 = vadd.f32 %v1254_v2, %v1253_v1  ;;  %v1274_v8 = vadd.f32 %v1273_v6, %v1272_v4  ;;  %v1275_v9 = vpop.f32.mrb[2].mxu1 }
 0x10b   :  { %v1276_v10 = vpop.f32.mrb[3].mxu1 }
 0x10c   :  { %v677_v7 = vadd.f32 %v1255_v5, %v1160_v62  ;;  %v715_v11 = vadd.f32 %v1274_v8, %v674_v3  ;;  %v1277_v12 = vadd.f32 %v1276_v10, %v1275_v9  ;;  %v1057_v62 = vunpack.c.l.s4 %v1500_v61 }
 0x10e   :  { %v718_v13 = vadd.f32 %v1277_v12, %v677_v7  ;;  %v1058_v1 = vunpack.c.0.s8 %v1057_v62 }
 0x110   :  { %v796_v14 = vpop.f32.mrb[4].mxu1  ;;  %v1061_v5 = vsub.s32 %v1058_v1, %v1553_v32 }
 0x111   :  { %v1324_v15 = vpop.f32.mrb[5].mxu1 }
 0x112   :  { %v799_v16 = vpop.f32.mrb[6].mxu1 }
 0x113   :  { %v1325_v17 = vpop.f32.mrb[7].mxu1 }
 0x126   :  { %v1294_v18 = vpop.f32.mrb[4].mxu0 }
 0x127   :  { %v1295_v19 = vpop.f32.mrb[5].mxu0 }
 0x128   :  { %v1296_v20 = vadd.f32 %v1295_v19, %v1294_v18  ;;  %v1297_v21 = vpop.f32.mrb[6].mxu0 }
 0x129   :  { %v1298_v22 = vpop.f32.mrb[7].mxu0 }
 0x12a   :  { %v756_v23 = vadd.f32 %v1296_v20, %v715_v11  ;;  %v1299_v24 = vadd.f32 %v1298_v22, %v1297_v21 }
 0x12c   :  { %v797_v25 = vadd.f32 %v796_v14, %v756_v23  ;;  %v759_v26 = vadd.f32 %v1299_v24, %v718_v13 }
 0x12e   :  { %v800_v27 = vadd.f32 %v799_v16, %v759_v26  ;;  %v803_v28 = vmax.f32 %v797_v25, 0.0 }
 0x130   :  { %v804_v29 = vmax.f32 %v800_v27, 0.0 }
 0x132   :  { %v805_v30 = vpack.c.bf16 %v804_v29, %v803_v28 }
 0x134   :  { %1343 = vmatmul.mubr.bf16.vlgmr.msra.gmra.mrb[8].mxu1 %v805_v30 }
 0x207   :  { %v911_v35 = vpop.f32.mrb[8].mxu1 }
 0x208   :  { %v912_v37 = vadd.f32 %v1211_v34, %v911_v35  ;;  %v1344_v38 = vpop.f32.mrb[9].mxu1 }
 0x209   :  { %v914_v39 = vpop.f32.mrb[10].mxu1 }
 0x20a   :  { %v915_v40 = vadd.f32 %v1211_v34, %v914_v39  ;;  %v1345_v41 = vpop.f32.mrb[11].mxu1  ;;  %v918_v42 = vmax.f32 %v912_v37, 0.0 }
 0x20c   :  { %v919_v43 = vmax.f32 %v915_v40, 0.0 }
 0x20e   :  { %v920_v44 = vpack.c.bf16 %v919_v43, %v918_v42 }
 0x210   :  { %1363 = vmatmul.mubr.bf16.vlgmr.msra.gmra.mrb[8].mxu0 %v920_v44 }
 0x2e3   :  { %v1026_v45 = vpop.f32.mrb[8].mxu0 }
 0x2e4   :  { %v1027_v36 = vadd.f32 %v1220_v58, %v1026_v45  ;;  %v1364_v46 = vpop.f32.mrb[9].mxu0 }
 0x2e5   :  { %v1029_v47 = vpop.f32.mrb[10].mxu0 }
 0x2e6   :  { %1033 = vmax.xlane.f32.xlu0 %v1027_v36  ;;  %v1365_v48 = vpop.f32.mrb[11].mxu0  ;;  %v1030_v49 = vadd.f32 %v1220_v58, %v1029_v47 }
 0x2ea   :  { %1035 = vmax.xlane.f32.xlu0 %v1030_v49 }
 0x373   :  { %v1034_v50 = vpop.xlane.xlu0 %1033 }
 0x374   :  { %v1037_v51 = vsub.f32 %v1027_v36, %v1034_v50 }
 0x376   :  { %v1039_v52 = vmul.f32 1.442695, %v1037_v51 }
 0x377   :  { %v1036_v53 = vpop.xlane.xlu0 %1035 }
 0x378   :  { %v1038_v54 = vsub.f32 %v1030_v49, %v1036_v53  ;;  %1462 = vpow2.f32 %v1039_v52 }
 0x37a   :  { %v1041_v55 = vmul.f32 1.442695, %v1038_v54 }
 0x37c   :  { %1464 = vpow2.f32 %v1041_v55 }
 0x382   :  { %v1463_v56 = vpop.eup %1462 }
 0x383   :  { %1043 = vadd.xlane.f32.xlu1 %v1463_v56 }
 0x386   :  { %v1465_v57 = vpop.eup %1464 }
 0x387   :  { %1045 = vadd.xlane.f32.xlu1 %v1465_v57 }
 0x410   :  { %v1044_v59 = vpop.xlane.xlu1 %1043 }
 0x411   :  { %1466 = vlog2.f32 %v1044_v59 }
 0x414   :  { %v1046_v60 = vpop.xlane.xlu1 %1045 }
 0x415   :  { %1468 = vlog2.f32 %v1046_v60 }
 0x41b   :  { %v1467_v63 = vpop.eup %1466 }
 0x41c   :  { %v1048_v0 = vmul.f32 0.6931472, %v1467_v63 }
 0x41e   :  { %v1051_v4 = vsub.f32 %v1037_v51, %v1048_v0 }
 0x41f   :  { %v1469_v2 = vpop.eup %1468 }
 0x420   :  { %v1050_v3 = vmul.f32 0.6931472, %v1469_v2 }
 0x422   :  { %v1052_v6 = vsub.f32 %v1038_v54, %v1050_v3 }
 0x424   :  { %v1053_v7 = vpack.c.bf16 %v1052_v6, %v1051_v4 }
 0x426   :  { %v1062_v8 = vrot.slane %v1053_v7, %v1061_v5 }
 0x428   :  { %1230 = vst.sshfl [vmem:[#allocation4] sm:$0x1 pattern:$0x73625140] %v1062_v8 }
 0x42f   :  { %v1137_v9 = vld [vmem:[#allocation4] sm:$0x1] }
 0x430   :  { %1138 = vst [vmem:[%s1714_s7] sm:$0x1] %v1137_v9 }
 0x431   :  { %1155 = vsyncpa [#allocation3], 1 }

</bundles_post_ra>
